<compile_context>
chip_gen: v7x
topology: tpu7x:2x2x1
jax: 0.10.0
libtpu: 0.0.40
codegen_flags: <defaults>
</compile_context>

<pallas_src>
import functools

import jax
import jax.numpy as jnp
from jax.experimental import pallas as pl
from jax.experimental.pallas import tpu as pltpu


# ---------------------------------------------------------------------------
# Small helpers
# ---------------------------------------------------------------------------
def _round_up(x, m):
    return ((x + m - 1) // m) * m


def _choose_tm(n16):
    """Largest A_hat row tile (multiple of 16 for bf16 sublane packing) whose
    double-buffered bf16 copies stay within a conservative VMEM budget
    (v7x has only 64 MiB physical VMEM)."""
    budget = 32 * 1024 * 1024
    tm = max(16, (min(n16, 512) // 16) * 16)
    while tm > 16 and 2 * tm * n16 * 2 > budget:
        tm -= 16
    return tm


def _vmem_limit_bytes(n_pad, tm, f_in, f_hid, g, f_out):
    a_tiles = 2 * tm * n_pad * 2                      # double-buffered bf16 A tiles
    resident = 4 * (n_pad * f_in + g * n_pad + f_in * f_hid + f_hid * f_hid
                    + 2 * f_hid + f_hid * f_out + f_out + g * f_out)
    scratch = n_pad * f_hid * (2 + 4)                 # XW (bf16) + H (f32)
    est = a_tiles + resident + scratch
    # never below the default scoped limit; stay clear of v7x 64 MiB physical.
    return int(min(48 * 1024 * 1024, max(32 * 1024 * 1024, 4 * est)))


# ---------------------------------------------------------------------------
# Fused Pallas kernel: 2x GCN layer + pool + linear
# ---------------------------------------------------------------------------
def fused_gcn_kernel(a_ref, x_ref, p_ref, w1_ref, w2_ref, shifts_ref,
                     wl_ref, bl_ref, o_ref, xw_ref, h_ref):
    phase = pl.program_id(0)          # which conv layer (0 or 1)
    tile = pl.program_id(1)           # which A_hat row tile
    last_phase = pl.num_programs(0) - 1
    last_tile = pl.num_programs(1) - 1
    tm = a_ref.shape[0]

    # ---- per-layer prologue: XW for the whole graph, resident in VMEM ----
    @pl.when(jnp.logical_and(phase == 0, tile == 0))
    def _():
        xw_ref[...] = jnp.dot(
            x_ref[...], w1_ref[...],
            preferred_element_type=jnp.float32).astype(jnp.bfloat16)

    @pl.when(jnp.logical_and(phase == 1, tile == 0))
    def _():
        # consumes the previous layer's H (fully written during phase 0)
        xw_ref[...] = jnp.dot(
            h_ref[...], w2_ref[...],
            preferred_element_type=jnp.float32).astype(jnp.bfloat16)

    # ---- row-tile aggregation: A_hat[tile] @ XW (bf16 MXU, f32 accumulate) --
    agg = jnp.dot(a_ref[...], xw_ref[...], preferred_element_type=jnp.float32)

    # folded GCNConv bias (+ BatchNorm eval shift for the BN'd layer)
    shift = shifts_ref[phase]                         # [1, F_hid]
    h = agg + shift
    h = jnp.where(h > 0, h, 0.03 * h)                 # LeakyReLU(0.03)

    row0 = pl.multiple_of(tile * tm, tm)
    h_ref[pl.ds(row0, tm), :] = h

    # ---- epilogue: global_mean_pool + Linear, written to HBM exactly once ---
    @pl.when(jnp.logical_and(phase == last_phase, tile == last_tile))
    def _():
        pooled = jnp.dot(p_ref[...], h_ref[...],
                         preferred_element_type=jnp.float32)
        # F.dropout(p=0.5, training=False) is the identity.
        out = jnp.dot(pooled, wl_ref[...], preferred_element_type=jnp.float32)
        o_ref[...] = (out + bl_ref[...]).astype(o_ref.dtype)


# ---------------------------------------------------------------------------
# Host-side graph preprocessing (plain JAX; done once per forward / jit)
# ---------------------------------------------------------------------------
def build_normalized_adjacency(edge_index, num_nodes):
    """Dense D^-1/2 (A + I) D^-1/2 as in PyG GCNConv (add_self_loops=True)."""
    src, dst = edge_index[0], edge_index[1]
    a = jnp.zeros((num_nodes, num_nodes), jnp.float32)
    a = a.at[dst, src].add(1.0)            # message flows src -> dst
    a = a + jnp.eye(num_nodes, dtype=jnp.float32)
    deg = a.sum(axis=1)
    dinv = jnp.where(deg > 0, 1.0 / jnp.sqrt(deg), 0.0)
    return dinv[:, None] * a * dinv[None, :]


def build_mean_pool_matrix(batch, num_graphs, num_nodes):
    onehot = (batch[None, :] == jnp.arange(num_graphs)[:, None]).astype(jnp.float32)
    counts = jnp.maximum(onehot.sum(axis=1, keepdims=True), 1.0)
    return onehot / counts                 # [G, N]


def _fold_bn(w, b, gamma, beta, rmean, rvar, eps=1e-5):
    """Fold eval-mode BatchNorm1d into the conv weight / additive shift."""
    scale = gamma / jnp.sqrt(rvar + eps)
    w_f = w * scale[None, :]
    shift = b * scale + (beta - rmean * scale)
    return w_f, shift


# ---------------------------------------------------------------------------
# Forward wrapper
# ---------------------------------------------------------------------------
def gcn_forward(params, x, edge_index, batch, num_graphs, tm=None):
    n, f_in = x.shape
    assert len(params["convs"]) == 2, "fused kernel is specialized for 2 convs"
    (w1, b1), (w2, b2) = params["convs"]
    f_hid = w1.shape[1]
    assert w2.shape == (f_hid, f_hid)
    wl, bl = params["lin"]
    f_out = wl.shape[1]

    # BN applied only for conv 0 (module: i < len(batchnorms) - 1); fold it.
    gamma, beta, rmean, rvar = params["bns"][0]
    w1f, shift1 = _fold_bn(w1, b1, gamma, beta, rmean, rvar)
    w2f, shift2 = w2, b2
    shifts = jnp.stack([shift1, shift2]).reshape(2, 1, f_hid).astype(jnp.float32)

    # ---- geometry / padding (bf16 sublane packing wants multiples of 16) ----
    n16 = _round_up(n, 16)
    if tm is None:
        tm = _choose_tm(n16)
    else:
        tm = min(max(16, _round_up(int(tm), 16)), n16)
    n_pad = _round_up(n16, tm)
    num_tiles = n_pad // tm

    a_hat = build_normalized_adjacency(edge_index, n)
    a_hat = jnp.pad(a_hat, ((0, n_pad - n), (0, n_pad - n))).astype(jnp.bfloat16)
    p = build_mean_pool_matrix(batch, num_graphs, n)
    p = jnp.pad(p, ((0, 0), (0, n_pad - n))).astype(jnp.float32)
    x_p = jnp.pad(x.astype(jnp.float32), ((0, n_pad - n), (0, 0)))
    bl2 = bl.reshape(1, f_out).astype(jnp.float32)

    const2 = lambda ph, i: (0, 0)
    const3 = lambda ph, i: (0, 0, 0)

    return pl.pallas_call(
        fused_gcn_kernel,
        out_shape=jax.ShapeDtypeStruct((num_graphs, f_out), jnp.float32),
        grid_spec=pltpu.PrefetchScalarGridSpec(
            num_scalar_prefetch=0,
            grid=(2, num_tiles),                     # (conv layer, A row tile)
            in_specs=[
                pl.BlockSpec((tm, n_pad), lambda ph, i: (i, 0)),  # A_hat tile
                pl.BlockSpec((n_pad, f_in), const2),              # X (resident)
                pl.BlockSpec((num_graphs, n_pad), const2),        # pooling P
                pl.BlockSpec((f_in, f_hid), const2),              # W1 (BN folded)
                pl.BlockSpec((f_hid, f_hid), const2),             # W2
                pl.BlockSpec((2, 1, f_hid), const3),              # shifts
                pl.BlockSpec((f_hid, f_out), const2),             # W_lin
                pl.BlockSpec((1, f_out), const2),                 # b_lin
            ],
            out_specs=pl.BlockSpec((num_graphs, f_out), const2),
            scratch_shapes=[
                pltpu.VMEM((n_pad, f_hid), jnp.bfloat16),         # XW (per layer)
                pltpu.VMEM((n_pad, f_hid), jnp.float32),          # H  (per layer)
            ],
        ),
        compiler_params=pltpu.CompilerParams(
            # row tiles feed later layers via the shared VMEM H scratch, so the
            # tile axis must stay "arbitrary" (no megacore sharding here).
            dimension_semantics=("arbitrary", "arbitrary"),
            vmem_limit_bytes=_vmem_limit_bytes(n_pad, tm, f_in, f_hid,
                                               num_graphs, f_out),
        ),
    )(a_hat, x_p, p,
      w1f.astype(jnp.float32), w2f.astype(jnp.float32), shifts,
      wl.astype(jnp.float32), bl2)


# ---------------------------------------------------------------------------
# Pure-JAX reference (f32) for a correctness cross-check
# ---------------------------------------------------------------------------
def gcn_reference(params, x, edge_index, batch, num_graphs):
    n = x.shape[0]
    a_hat = build_normalized_adjacency(edge_index, n)
    p = build_mean_pool_matrix(batch, num_graphs, n)
    h = x.astype(jnp.float32)
    for i, (w, b) in enumerate(params["convs"]):
        h = a_hat @ (h @ w) + b[None, :]
        if i < len(params["bns"]) - 1:                 # BN only on conv 0
            gamma, beta, rmean, rvar = params["bns"][i]
            h = (h - rmean) / jnp.sqrt(rvar + 1e-5) * gamma + beta
        h = jnp.where(h > 0, h, 0.03 * h)              # LeakyReLU(0.03)
    pooled = p @ h
    wl, bl = params["lin"]
    return pooled @ wl + bl[None, :]


# ---------------------------------------------------------------------------
# Parameter init (matches the module's shapes; BN uses eval running stats)
# ---------------------------------------------------------------------------
def init_params(key, neurons_per_layer, last_layer_neurons):
    params = {"convs": [], "bns": [], "lin": None}
    num_convs = len(neurons_per_layer) - 2             # last_layer_dense=True
    keys = jax.random.split(key, num_convs * 6 + 2)
    ki = 0
    for i in range(num_convs):
        fin, fout = neurons_per_layer[i], neurons_per_layer[i + 1]
        w = jax.random.normal(keys[ki], (fin, fout), jnp.float32) / jnp.sqrt(fin)
        ki += 1
        b = 0.05 * jax.random.normal(keys[ki], (fout,), jnp.float32); ki += 1
        params["convs"].append((w, b))
        gamma = 1.0 + 0.1 * jax.random.normal(keys[ki], (fout,), jnp.float32); ki += 1
        beta = 0.1 * jax.random.normal(keys[ki], (fout,), jnp.float32); ki += 1
        rmean = 0.1 * jax.random.normal(keys[ki], (fout,), jnp.float32); ki += 1
        rvar = 1.0 + 0.2 * jax.random.uniform(keys[ki], (fout,), jnp.float32); ki += 1
        params["bns"].append((gamma, beta, rmean, rvar))
    fin, fout = neurons_per_layer[-2], last_layer_neurons
    wl = jax.random.normal(keys[ki], (fin, fout), jnp.float32) / jnp.sqrt(fin)
    ki += 1
    bl = 0.01 * jax.random.normal(keys[ki], (fout,), jnp.float32)
    params["lin"] = (wl, bl)
    return params


# ---------------------------------------------------------------------------
# Example run
# ---------------------------------------------------------------------------
if __name__ == "__main__":
    neurons_per_layer = [16, 32, 32, 8]        # node_features_dim = 16
    last_layer_neurons = neurons_per_layer[-1]

    key = jax.random.PRNGKey(0)
    k_param, k_x = jax.random.split(key)

    # Two ring graphs of 16 nodes each -> N = 32 nodes, G = 2 graphs.
    num_graphs = 2
    nodes_per_graph = 16
    n = num_graphs * nodes_per_graph

    srcs, dsts = [], []
    for g in range(num_graphs):
        off = g * nodes_per_graph
        for v in range(nodes_per_graph):
            u, w_ = off + v, off + (v + 1) % nodes_per_graph
            srcs += [u, w_]
            dsts += [w_, u]
    edge_index = jnp.array([srcs, dsts], dtype=jnp.int32)            # [2, E]
    batch = jnp.repeat(jnp.arange(num_graphs, dtype=jnp.int32),
                       nodes_per_graph)                               # [N]

    x = jax.random.normal(k_x, (n, neurons_per_layer[0]), jnp.float32)
    params = init_params(k_param, neurons_per_layer, last_layer_neurons)

    # tm=16 -> 2 A_hat row tiles: exercises the tiled, pipelined path.
    fwd = jax.jit(functools.partial(gcn_forward, num_graphs=num_graphs, tm=16))
    out = jax.block_until_ready(fwd(params, x, edge_index, batch))

    ref = gcn_reference(params, x, edge_index, batch, num_graphs)
    err = float(jnp.max(jnp.abs(out - ref)))
    tol = 0.1 * (1.0 + float(jnp.max(jnp.abs(ref))))   # bf16 adjacency matmuls

    assert out.shape == (num_graphs, last_layer_neurons)
    assert bool(jnp.all(jnp.isfinite(out)))
    assert err < tol, f"mismatch vs f32 reference: {err} >= {tol}"
    print("KERNEL_OK")
</pallas_src>

<mosaic_0001>
module attributes {stable_mosaic.version = 11 : i64} {
  func.func private @main(%arg0: i32) attributes {dimension_semantics = [#tpu.dimension_semantics<core_parallel>], iteration_bounds = array<i64: 2>, tpu.core_type = #tpu.core_type<sc_scalar_subcore>, window_params = []} {
    return
  }
}

module attributes {stable_mosaic.version = 11 : i64} {
  func.func private @main(%arg0: i32) attributes {dimension_semantics = [#tpu.dimension_semantics<core_parallel>], iteration_bounds = array<i64: 2>, tpu.core_type = #tpu.core_type<sc_scalar_subcore>, window_params = []} {
    return
  }
}

module attributes {stable_mosaic.version = 11 : i64} {
  func.func @fused_gcn_kernel(%arg0: i32, %arg1: i32, %arg2: memref<16x32xbf16, #tpu.memory_space<vmem>>, %arg3: memref<32x16xf32, #tpu.memory_space<vmem>>, %arg4: memref<2x32xf32, #tpu.memory_space<vmem>>, %arg5: memref<16x32xf32, #tpu.memory_space<vmem>>, %arg6: memref<32x32xf32, #tpu.memory_space<vmem>>, %arg7: memref<2x1x32xf32, #tpu.memory_space<vmem>>, %arg8: memref<32x8xf32, #tpu.memory_space<vmem>>, %arg9: memref<1x8xf32, #tpu.memory_space<vmem>>, %arg10: memref<2x8xf32, #tpu.memory_space<vmem>>, %arg11: memref<32x32xbf16, #tpu.memory_space<vmem>>, %arg12: memref<32x32xf32, #tpu.memory_space<vmem>>) attributes {dimension_semantics = [#tpu.dimension_semantics<arbitrary>, #tpu.dimension_semantics<arbitrary>], iteration_bounds = array<i64: 2, 2>, scalar_prefetch = 0 : i64, scratch_operands = 2 : i64, tpu.core_type = #tpu.core_type<tc>, window_params = [{transform_indices = @transform_0, window_bounds = array<i64: 16, 32>}, {pipeline_mode = #tpu.pipeline_mode<synchronous>, transform_indices = @transform_1, window_bounds = array<i64: 32, 16>}, {pipeline_mode = #tpu.pipeline_mode<synchronous>, transform_indices = @transform_2, window_bounds = array<i64: 2, 32>}, {pipeline_mode = #tpu.pipeline_mode<synchronous>, transform_indices = @transform_3, window_bounds = array<i64: 16, 32>}, {pipeline_mode = #tpu.pipeline_mode<synchronous>, transform_indices = @transform_4, window_bounds = array<i64: 32, 32>}, {pipeline_mode = #tpu.pipeline_mode<synchronous>, transform_indices = @transform_5, window_bounds = array<i64: 2, 1, 32>}, {pipeline_mode = #tpu.pipeline_mode<synchronous>, transform_indices = @transform_6, window_bounds = array<i64: 32, 8>}, {pipeline_mode = #tpu.pipeline_mode<synchronous>, transform_indices = @transform_7, window_bounds = array<i64: 1, 8>}, {pipeline_mode = #tpu.pipeline_mode<synchronous>, transform_indices = @transform_8, window_bounds = array<i64: 2, 8>}]} {
    %c0_i32 = arith.constant 0 : i32
    %0 = arith.cmpi eq, %arg0, %c0_i32 : i32
    %c0_i32_0 = arith.constant 0 : i32
    %1 = arith.cmpi eq, %arg1, %c0_i32_0 : i32
    %2 = arith.andi %0, %1 : i1
    %3 = arith.extui %2 : i1 to i32
    %c0_i32_1 = arith.constant 0 : i32
    %4 = arith.cmpi ne, %3, %c0_i32_1 : i32
    scf.if %4 {
      %c0_15 = arith.constant 0 : index
      %c0_16 = arith.constant 0 : index
      %32 = vector.load %arg3[%c0_15, %c0_16] : memref<32x16xf32, #tpu.memory_space<vmem>>, vector<32x16xf32>
      %c0_17 = arith.constant 0 : index
      %c0_18 = arith.constant 0 : index
      %33 = vector.load %arg5[%c0_17, %c0_18] : memref<16x32xf32, #tpu.memory_space<vmem>>, vector<16x32xf32>
      %cst_19 = arith.constant dense<0.000000e+00> : vector<32x32xf32>
      %34 = tpu.matmul %32, %33, %cst_19 {dimension_numbers = #tpu.dot_dimension_numbers<[1], [0], [0], [1], [0, 0, 1, 1], [], []>} : vector<32x16xf32>, vector<16x32xf32>, vector<32x32xf32> -> vector<32x32xf32>
      %35 = arith.truncf %34 : vector<32x32xf32> to vector<32x32xbf16>
      %c0_20 = arith.constant 0 : index
      %c0_21 = arith.constant 0 : index
      %36 = vector.load %arg11[%c0_20, %c0_21] : memref<32x32xbf16, #tpu.memory_space<vmem>>, vector<32x32xbf16>
      tpu.vector_store %arg11[%c0_20, %c0_21], %35 {strides = array<i32>} : memref<32x32xbf16, #tpu.memory_space<vmem>>, vector<32x32xbf16>,
    } else {
    }
    %c1_i32 = arith.constant 1 : i32
    %5 = arith.cmpi eq, %arg0, %c1_i32 : i32
    %c0_i32_2 = arith.constant 0 : i32
    %6 = arith.cmpi eq, %arg1, %c0_i32_2 : i32
    %7 = arith.andi %5, %6 : i1
    %8 = arith.extui %7 : i1 to i32
    %c0_i32_3 = arith.constant 0 : i32
    %9 = arith.cmpi ne, %8, %c0_i32_3 : i32
    scf.if %9 {
      %c0_15 = arith.constant 0 : index
      %c0_16 = arith.constant 0 : index
      %32 = vector.load %arg12[%c0_15, %c0_16] : memref<32x32xf32, #tpu.memory_space<vmem>>, vector<32x32xf32>
      %c0_17 = arith.constant 0 : index
      %c0_18 = arith.constant 0 : index
      %33 = vector.load %arg6[%c0_17, %c0_18] : memref<32x32xf32, #tpu.memory_space<vmem>>, vector<32x32xf32>
      %cst_19 = arith.constant dense<0.000000e+00> : vector<32x32xf32>
      %34 = tpu.matmul %32, %33, %cst_19 {dimension_numbers = #tpu.dot_dimension_numbers<[1], [0], [0], [1], [0, 0, 1, 1], [], []>} : vector<32x32xf32>, vector<32x32xf32>, vector<32x32xf32> -> vector<32x32xf32>
      %35 = arith.truncf %34 : vector<32x32xf32> to vector<32x32xbf16>
      %c0_20 = arith.constant 0 : index
      %c0_21 = arith.constant 0 : index
      %36 = vector.load %arg11[%c0_20, %c0_21] : memref<32x32xbf16, #tpu.memory_space<vmem>>, vector<32x32xbf16>
      tpu.vector_store %arg11[%c0_20, %c0_21], %35 {strides = array<i32>} : memref<32x32xbf16, #tpu.memory_space<vmem>>, vector<32x32xbf16>,
    } else {
    }
    %c0 = arith.constant 0 : index
    %c0_4 = arith.constant 0 : index
    %10 = vector.load %arg2[%c0, %c0_4] : memref<16x32xbf16, #tpu.memory_space<vmem>>, vector<16x32xbf16>
    %c0_5 = arith.constant 0 : index
    %c0_6 = arith.constant 0 : index
    %11 = vector.load %arg11[%c0_5, %c0_6] : memref<32x32xbf16, #tpu.memory_space<vmem>>, vector<32x32xbf16>
    %cst = arith.constant dense<0.000000e+00> : vector<16x32xf32>
    %12 = tpu.matmul %10, %11, %cst {dimension_numbers = #tpu.dot_dimension_numbers<[1], [0], [0], [1], [0, 0, 1, 1], [], []>} : vector<16x32xbf16>, vector<32x32xbf16>, vector<16x32xf32> -> vector<16x32xf32>
    %13 = arith.index_cast %arg0 : i32 to index
    %c0_7 = arith.constant 0 : index
    %c0_8 = arith.constant 0 : index
    %14 = vector.load %arg7[%13, %c0_7, %c0_8] : memref<2x1x32xf32, #tpu.memory_space<vmem>>, vector<1x1x32xf32>
    %15 = vector.shape_cast %14 : vector<1x1x32xf32> to vector<1x32xf32>
    %16 = vector.broadcast %15 : vector<1x32xf32> to vector<16x32xf32>
    %17 = arith.addf %12, %16 : vector<16x32xf32>
    %cst_9 = arith.constant 0.000000e+00 : f32
    %18 = vector.broadcast %cst_9 : f32 to vector<16x32xf32>
    %19 = arith.cmpf ogt, %17, %18 : vector<16x32xf32>
    %cst_10 = arith.constant 3.000000e-02 : f32
    %20 = vector.broadcast %cst_10 : f32 to vector<16x32xf32>
    %21 = arith.mulf %20, %17 : vector<16x32xf32>
    %22 = arith.select %19, %17, %21 : vector<16x32xi1>, vector<16x32xf32>
    %c16_i32 = arith.constant 16 : i32
    %23 = arith.muli %arg1, %c16_i32 : i32
    %24 = tpu.assume_multiple %23, 16 : i32
    %25 = arith.index_cast %24 : i32 to index
    %c0_11 = arith.constant 0 : index
    %26 = vector.load %arg12[%25, %c0_11] : memref<32x32xf32, #tpu.memory_space<vmem>>, vector<16x32xf32>
    tpu.vector_store %arg12[%25, %c0_11], %22 {strides = array<i32>} : memref<32x32xf32, #tpu.memory_space<vmem>>, vector<16x32xf32>,
    %c1_i32_12 = arith.constant 1 : i32
    %27 = arith.cmpi eq, %arg0, %c1_i32_12 : i32
    %c1_i32_13 = arith.constant 1 : i32
    %28 = arith.cmpi eq, %arg1, %c1_i32_13 : i32
    %29 = arith.andi %27, %28 : i1
    %30 = arith.extui %29 : i1 to i32
    %c0_i32_14 = arith.constant 0 : i32
    %31 = arith.cmpi ne, %30, %c0_i32_14 : i32
    scf.if %31 {
      %c0_15 = arith.constant 0 : index
      %c0_16 = arith.constant 0 : index
      %32 = vector.load %arg4[%c0_15, %c0_16] : memref<2x32xf32, #tpu.memory_space<vmem>>, vector<2x32xf32>
      %c0_17 = arith.constant 0 : index
      %c0_18 = arith.constant 0 : index
      %33 = vector.load %arg12[%c0_17, %c0_18] : memref<32x32xf32, #tpu.memory_space<vmem>>, vector<32x32xf32>
      %cst_19 = arith.constant dense<0.000000e+00> : vector<2x32xf32>
      %34 = tpu.matmul %32, %33, %cst_19 {dimension_numbers = #tpu.dot_dimension_numbers<[1], [0], [0], [1], [0, 0, 1, 1], [], []>} : vector<2x32xf32>, vector<32x32xf32>, vector<2x32xf32> -> vector<2x32xf32>
      %c0_20 = arith.constant 0 : index
      %c0_21 = arith.constant 0 : index
      %35 = vector.load %arg8[%c0_20, %c0_21] : memref<32x8xf32, #tpu.memory_space<vmem>>, vector<32x8xf32>
      %cst_22 = arith.constant dense<0.000000e+00> : vector<2x8xf32>
      %36 = tpu.matmul %34, %35, %cst_22 {dimension_numbers = #tpu.dot_dimension_numbers<[1], [0], [0], [1], [0, 0, 1, 1], [], []>} : vector<2x32xf32>, vector<32x8xf32>, vector<2x8xf32> -> vector<2x8xf32>
      %c0_23 = arith.constant 0 : index
      %c0_24 = arith.constant 0 : index
      %37 = vector.load %arg9[%c0_23, %c0_24] : memref<1x8xf32, #tpu.memory_space<vmem>>, vector<1x8xf32>
      %38 = vector.broadcast %37 : vector<1x8xf32> to vector<2x8xf32>
      %39 = arith.addf %36, %38 : vector<2x8xf32>
      %c0_25 = arith.constant 0 : index
      %c0_26 = arith.constant 0 : index
      %40 = vector.load %arg10[%c0_25, %c0_26] : memref<2x8xf32, #tpu.memory_space<vmem>>, vector<2x8xf32>
      tpu.vector_store %arg10[%c0_25, %c0_26], %39 {strides = array<i32>} : memref<2x8xf32, #tpu.memory_space<vmem>>, vector<2x8xf32>,
    } else {
    }
    return
  }
  func.func @transform_0(%arg0: i32, %arg1: i32) -> (i32, i32) {
    %c0_i32 = arith.constant 0 : i32
    %c0_i32_0 = arith.constant 0 : i32
    return %arg1, %c0_i32 : i32, i32
  }
  func.func @transform_1(%arg0: i32, %arg1: i32) -> (i32, i32) {
    %c0_i32 = arith.constant 0 : i32
    %c0_i32_0 = arith.constant 0 : i32
    %c0_i32_1 = arith.constant 0 : i32
    return %c0_i32, %c0_i32_0 : i32, i32
  }
  func.func @transform_2(%arg0: i32, %arg1: i32) -> (i32, i32) {
    %c0_i32 = arith.constant 0 : i32
    %c0_i32_0 = arith.constant 0 : i32
    %c0_i32_1 = arith.constant 0 : i32
    return %c0_i32, %c0_i32_0 : i32, i32
  }
  func.func @transform_3(%arg0: i32, %arg1: i32) -> (i32, i32) {
    %c0_i32 = arith.constant 0 : i32
    %c0_i32_0 = arith.constant 0 : i32
    %c0_i32_1 = arith.constant 0 : i32
    return %c0_i32, %c0_i32_0 : i32, i32
  }
  func.func @transform_4(%arg0: i32, %arg1: i32) -> (i32, i32) {
    %c0_i32 = arith.constant 0 : i32
    %c0_i32_0 = arith.constant 0 : i32
    %c0_i32_1 = arith.constant 0 : i32
    return %c0_i32, %c0_i32_0 : i32, i32
  }
  func.func @transform_5(%arg0: i32, %arg1: i32) -> (i32, i32, i32) {
    %c0_i32 = arith.constant 0 : i32
    %c0_i32_0 = arith.constant 0 : i32
    %c0_i32_1 = arith.constant 0 : i32
    %c0_i32_2 = arith.constant 0 : i32
    return %c0_i32, %c0_i32_0, %c0_i32_1 : i32, i32, i32
  }
  func.func @transform_6(%arg0: i32, %arg1: i32) -> (i32, i32) {
    %c0_i32 = arith.constant 0 : i32
    %c0_i32_0 = arith.constant 0 : i32
    %c0_i32_1 = arith.constant 0 : i32
    return %c0_i32, %c0_i32_0 : i32, i32
  }
  func.func @transform_7(%arg0: i32, %arg1: i32) -> (i32, i32) {
    %c0_i32 = arith.constant 0 : i32
    %c0_i32_0 = arith.constant 0 : i32
    %c0_i32_1 = arith.constant 0 : i32
    return %c0_i32, %c0_i32_0 : i32, i32
  }
  func.func @transform_8(%arg0: i32, %arg1: i32) -> (i32, i32) {
    %c0_i32 = arith.constant 0 : i32
    %c0_i32_0 = arith.constant 0 : i32
    %c0_i32_1 = arith.constant 0 : i32
    return %c0_i32, %c0_i32_0 : i32, i32
  }
}

</mosaic_0001>

<bundles_post_ra>
// kernel: gcn_forward.1
= control target key start
LH: loop header
LB: loop body
LE: loop exit
PB: predicated region body
PF: predicated region fallthrough
CT: control target
= control target key end

     0   :  { %13 = vsyncpa [#allocation5], 0  ;;  %s1149_s27 = smov 0   ;;  %s1151_s28 = smov 0   ;;  %s1316_s0 = inlined_call_operand.vmem [shape: bf16[32,32], index: 0, kind: input, shape index: {}]   ;;  %s1317_s1 = inlined_call_operand.vmem [shape: f32[32,16], index: 1, kind: input, shape index: {}]   ;;  %s1318_s2 = inlined_call_operand.vmem [shape: f32[2,32], index: 2, kind: input, shape index: {}]   ;;  %s1319_s3 = inlined_call_operand.vmem [shape: f32[16,32], index: 3, kind: input, shape index: {}]   ;;  %s1320_s4 = inlined_call_operand.vmem [shape: f32[32,32], index: 4, kind: input, shape index: {}]   ;;  %s1321_s5 = inlined_call_operand.vmem [shape: f32[2,1,32], index: 5, kind: input, shape index: {}]   ;;  %s1322_s6 = inlined_call_operand.vmem [shape: f32[32,8], index: 6, kind: input, shape index: {}]   ;;  %s1323_s7 = inlined_call_operand.vmem [shape: f32[1,8], index: 7, kind: input, shape index: {}]   ;;  %s1324_s8 = inlined_call_operand.hbm [shape: f32[2,8], index: 8, kind: output, shape index: {}]  }
   0x1   :  { %s1153_s29 = smov 0   ;;  %s1155_s30 = smov 0  }
   0x2   :  { %s1157_s9 = smov 0  }
   0x3 LB: > { %s839_s10 = sadd.s32 4294967295, %s1096_s9   ;;  %s28_s11 = sadd.s32 1, %s1088_s29  ;;  %s1096_s9 = sphi %s1157_s9, %s19_s9   ;;  %s1092_s30 = sphi %s1155_s30, %s1330_s30   ;;  %s1088_s29 = sphi %s1153_s29, %s1329_s29   ;;  %s1084_s28 = sphi %s1151_s28, %s1328_s28   ;;  %s1080_s27 = sphi %s1149_s27, %s1327_s27  }
   0x4   : > { %p29_p0 = scmp.ge.s32.totalorder %s28_s11, 2  ;;  %s31_s12 = sadd.s32 1, %s1092_s30 }
   0x5   : > { %p842_p1 = scmp.ge.s32.totalorder %s1096_s9, 1  ;;  %p271_p2 = scmp.lt.s32.totalorder %s1096_s9, 5 }
   0x6   : > { %s1332_s11 = smov (%p29_p0, %s28_s11), 0  ;;  %s1334_s12 = smov (!%p29_p0, %s31_s12), %s1092_s30 }
   0x7   : > { %p272_p3 = pnand %p842_p1, %p271_p2  ;;  %p33_p4 = scmp.ge.s32.totalorder %s1334_s12, 2 }
   0x8   : > { %s843_s13 = sshll.u32 (!%p272_p3), %s1080_s27, 1  ;;  %p307_p5 = scmp.eq.s32.totalorder (!%p272_p3), %s1084_s28, 0 }
   0x9   : > { %s1336_s12 = smov (%p33_p4, %s1334_s12), 0  ;;  %275 = sbr.rel (%p272_p3) target bundleno = 1172 (0x494), region = 52 }
   0xa   : > { %p301_p6 = scmp.lt.s32.totalorder (!%p272_p3), %s843_s13, 3  ;;  %p308_p7 = scmp.eq.s32.totalorder (!%p272_p3), %s1080_s27, 0 }
   0xc   : > { %p309_p8 = pnand (!%p272_p3), %p308_p7, %p307_p5 }
  0x10   : > { %s1338_s13 = smov (!%p301_p6, %s843_s13), 3  ;;  %312 = sbr.rel (%p309_p8) target bundleno = 240 (0xf0), region = 56 }
  0x11   : > { %s844_s14 = sshll.u32 %s1338_s13, 2  ;;  %v317_v0 = vld [vmem:[%s1319_s3] sm:$0xff] (!%p309_p8)  ;;  %v318_v1 = vld [vmem:[%s1319_s3 + $0x8] sm:$0xff] (!%p309_p8)  ;;  %vm319_vm0 = vcmask (!%p309_p8), 130048   ;;  %v315_v4 = vld [vmem:[%s1317_s1 + $0x10] sm:$0xff] (!%p309_p8)  ;;  %vm419_vm1 = vcmask (!%p309_p8), 261120  }
  0x12   : > { %s1192_s17 = scalar_lea.vmem %s1316_s0, %s844_s14  ;;  %v313_v2 = vld [vmem:[%s1317_s1] sm:$0xff] (!%p309_p8)  ;;  %v945_v3 = vpack.c.bf16 (!%p309_p8), %v318_v1, %v317_v0  ;;  %898 = vmatprep.mubr.msk.f32.mxu1 (!%p309_p8), %vm319_vm0, %v315_v4  ;;  %v314_v5 = vld [vmem:[%s1317_s1 + $0x8] sm:$0xff] (!%p309_p8)  ;;  %v316_v6 = vld [vmem:[%s1317_s1 + $0x18] sm:$0xff] (!%p309_p8) }
  0x13   : > { %895 = vmatprep.mubr.msk.f32.mxu0 (!%p309_p8), %vm319_vm0, %v313_v2 }
  0x14   : > { %946 = vmatprep.subr.bf16.mxu0 (!%p309_p8), %v945_v3  ;;  %969 = vmatprep.subr.bf16.mxu1 (!%p309_p8), %v945_v3 }
  0x15   : > { %948 = vmatpush3.bf16.msra.mxu0 (!%p309_p8), %v945_v3  ;;  %970 = vmatpush3.bf16.msra.mxu1 (!%p309_p8), %v945_v3 }
  0x18   : > { %896 = vmatmul.mubr.msk.f32.vlgmr.msra.gmra.mrb[0].mxu0 %vm319_vm0, %v314_v5  ;;  %899 = vmatmul.mubr.msk.f32.vlgmr.msra.gmra.mrb[0].mxu1 %vm319_vm0, %v316_v6 }
  0xeb   : > { %v897_v7 = vpop.f32.mrb[0].mxu0  ;;  %v900_v8 = vpop.f32.mrb[0].mxu1 }
  0xec   : > { %v398_v9 = vpop.f32.mrb[1].mxu0  ;;  %v408_v10 = vpop.f32.mrb[1].mxu1 }
  0xed   : > { %v417_v11 = vpack.c.bf16 %v897_v7, %v398_v9  ;;  %v418_v12 = vpack.c.bf16 %v900_v8, %v408_v10 }
  0xef   : > { %420 = vst.msk [vmem:[#allocation2] sm:$0xff] %vm419_vm1, %v417_v11  ;;  %421 = vst.msk [vmem:[#allocation2 + $0x8] sm:$0xff] %vm419_vm1, %v418_v12 }
  0xf0 PF: > { %p422_p9 = scmp.eq.s32.totalorder %s1084_s28, 1 }
  0xf2   : > { %p423_p10 = pnand %p422_p9, %p308_p7 }
  0xf3   : > { %v431_v13 = vld [vmem:[%s1320_s4] sm:$0xff] (!%p423_p10)  ;;  %v432_v14 = vld [vmem:[%s1320_s4 + $0x8] sm:$0xff] (!%p423_p10)  ;;  %v433_v15 = vld [vmem:[%s1320_s4 + $0x10] sm:$0xff] (!%p423_p10)  ;;  %vm435_vm2 = vcmask (!%p423_p10), 261120  }
  0xf4   : > { %426 = sbr.rel (%p423_p10) target bundleno = 470 (0x1d6), region = 60  ;;  %v949_v16 = vpack.c.bf16 (!%p423_p10), %v432_v14, %v431_v13  ;;  %v434_v17 = vld [vmem:[%s1320_s4 + $0x18] sm:$0xff] (!%p423_p10)  ;;  %v427_v18 = vld [vmem:[#allocation3] sm:$0xff] (!%p423_p10)  ;;  %v429_v19 = vld [vmem:[#allocation3 + $0x10] sm:$0xff] (!%p423_p10) }
  0xf5   : > { %v953_v20 = vpack.c.bf16 (!%p423_p10), %v434_v17, %v433_v15  ;;  %909 = vmatprep.mubr.msk.f32.mxu0 (!%p423_p10), %vm435_vm2, %v427_v18  ;;  %912 = vmatprep.mubr.msk.f32.mxu1 (!%p423_p10), %vm435_vm2, %v429_v19  ;;  %v428_v21 = vld [vmem:[#allocation3 + $0x8] sm:$0xff] (!%p423_p10)  ;;  %v430_v22 = vld [vmem:[#allocation3 + $0x18] sm:$0xff] (!%p423_p10) }
  0xf6   : > { %950 = vmatprep.subr.bf16.mxu0 (!%p423_p10), %v949_v16  ;;  %971 = vmatprep.subr.bf16.mxu1 (!%p423_p10), %v949_v16 }
  0xf7   : > { %952 = vmatpush3.bf16.msra.mxu0 (!%p423_p10), %v949_v16  ;;  %973 = vmatpush3.bf16.msra.mxu1 (!%p423_p10), %v949_v16 }
  0xf8   : > { %954 = vmatprep.subr.bf16.mxu0 (!%p423_p10), %v953_v20  ;;  %972 = vmatprep.subr.bf16.mxu1 (!%p423_p10), %v953_v20 }
  0xfb   : > { %956 = vmatpush3.bf16.msra.mxu0 %v953_v20  ;;  %974 = vmatpush3.bf16.msra.mxu1 %v953_v20 }
  0xfe   : > { %910 = vmatmul.mubr.msk.f32.vlgmr.msra.gmra.mrb[0].mxu0 %vm435_vm2, %v428_v21  ;;  %913 = vmatmul.mubr.msk.f32.vlgmr.msra.gmra.mrb[0].mxu1 %vm435_vm2, %v430_v22 }
 0x1d1   : > { %v911_v23 = vpop.f32.mrb[0].mxu0  ;;  %v914_v24 = vpop.f32.mrb[0].mxu1 }
 0x1d2   : > { %v514_v25 = vpop.f32.mrb[1].mxu0  ;;  %v524_v26 = vpop.f32.mrb[1].mxu1 }
 0x1d3   : > { %v533_v27 = vpack.c.bf16 %v911_v23, %v514_v25  ;;  %v534_v28 = vpack.c.bf16 %v914_v24, %v524_v26 }
 0x1d5   : > { %535 = vst.msk [vmem:[#allocation2] sm:$0xff] %vm435_vm2, %v533_v27  ;;  %536 = vst.msk [vmem:[#allocation2 + $0x8] sm:$0xff] %vm435_vm2, %v534_v28 }
 0x1d6 PF: > { %v1098_v30 = vmov 0.0   ;;  %vm1099_vm3 = vmmov 0   ;;  %v1027_v32 = vld [vmem:[%s1192_s17] sm:$0xff]   ;;  %vm554_vm4 = vcmask 261120   ;;  %p609_p11 = scmp.eq.s32.totalorder %s1080_s27, 1  ;;  %s541_s14 = scalar_lea.vmem %s1321_s5, %s1084_s28 }
 0x1d7   : > { %915 = vmatprep.subr.bf16.mxu0 %v1098_v30  ;;  %919 = vmatprep.mubr.msk.bf16.mxu0 %vm1099_vm3, %v1098_v30  ;;  %v853_v33 = vld [vmem:[%s541_s14] ss:$0 sm:$0xff]  ;;  %s856_s15 = sshll.u32 %s1080_s27, 4 }
 0x1d8   : > { %p1240_p12 = pnand %p609_p11, %p422_p9  ;;  %s606_s17 = scalar_lea.vmem [#allocation3], %s856_s15 }
 0x1d9   : > { %v1100_v47 = vmov (!%p1240_p12), 0.0|0.0   ;;  %vm1101_vm7 = vmmov (!%p1240_p12), 0   ;;  %v1102_v50 = vmov (!%p1240_p12), 0.0   ;;  %v692_v51 = vld [vmem:[%s1322_s6] sm:$0xff] (!%p1240_p12)  ;;  %v693_v52 = vld [vmem:[%s1322_s6 + $0x8] sm:$0xff] (!%p1240_p12)  ;;  %v694_v53 = vld [vmem:[%s1322_s6 + $0x10] sm:$0xff] (!%p1240_p12) }
 0x1da   : > { %963 = vmatprep.subr.bf16.mxu1 (!%p1240_p12), %v1100_v47  ;;  %v695_v54 = vld [vmem:[%s1322_s6 + $0x18] sm:$0xff] (!%p1240_p12)  ;;  %942 = vmatprep.mubr.msk.f32.mxu1 (!%p1240_p12), %vm1101_vm7, %v1102_v50  ;;  %v964_v56 = vpack.c.bf16 (!%p1240_p12), %v693_v52, %v692_v51  ;;  %v614_v58 = vld [vmem:[%s1318_s2] sm:$0x3] (!%p1240_p12)  ;;  %vm776_vm8 = vcmask (!%p1240_p12), 58368  }
 0x1db   : > { %v967_v57 = vpack.c.bf16 (!%p1240_p12), %v695_v54, %v694_v53  ;;  %v858_v61 = vld [vmem:[%s1323_s7] ss:$0 sm:$0xff] (!%p1240_p12) }
 0x1dc   : > { %v539_v29 = vld [vmem:[#allocation2] sm:$0xff]  ;;  %v540_v31 = vld [vmem:[#allocation2 + $0x8] sm:$0xff]  ;;  %965 = vmatpush3.bf16.msra.mxu1 (!%p1240_p12), %v964_v56 }
 0x1dd   : > { %916 = vmatpush3.bf16.msra.mxu0 %v539_v29  ;;  %966 = vmatprep.subr.bf16.mxu1 (!%p1240_p12), %v1100_v47 }
 0x1de   : > { %917 = vmatprep.subr.bf16.mxu0 %v1098_v30 }
 0x1e0   : > { %968 = vmatpush3.bf16.msra.mxu1 (!%p1240_p12), %v967_v57 }
 0x1e1   : > { %918 = vmatpush3.bf16.msra.mxu0 %v540_v31 }
 0x1e2   : > { %957 = vmatprep.subr.bf16.mxu0 (!%p1240_p12), %v1100_v47 }
 0x1e4   : > { %920 = vmatmul.mubr.msk.bf16.vlgmr.msra.gmra.mrb[0].mxu0 %vm554_vm4, %v1027_v32 }
 0x1e5   : > { %931 = vmatprep.mubr.msk.f32.mxu0 (!%p1240_p12), %vm1101_vm7, %v1102_v50 }
 0x2b7   : > { %v592_v34 = vpop.f32.mrb[0].mxu0 }
 0x2b8   : > { %v593_v35 = vadd.f32 %v853_v33, %v592_v34  ;;  %v921_v36 = vpop.f32.mrb[1].mxu0 }
 0x2b9   : > { %v595_v37 = vpop.f32.mrb[2].mxu0  ;;  %613 = sbr.rel (%p1240_p12) target bundleno = 1147 (0x47b), region = 64 }
 0x2ba   : > { %vm599_vm5 = vcmp.gt.f32.partialorder %v593_v35, 0.0  ;;  %v601_v38 = vmul.f32 0.03, %v593_v35  ;;  %v596_v39 = vadd.f32 %v853_v33, %v595_v37  ;;  %v922_v40 = vpop.f32.mrb[3].mxu0 }
 0x2bc   : > { %v603_v41 = vsel %vm599_vm5, %v593_v35, %v601_v38  ;;  %vm600_vm6 = vcmp.gt.f32.partialorder %v596_v39, 0.0  ;;  %v602_v42 = vmul.f32 0.03, %v596_v39 }
 0x2bd   : > { %607 = vst.msk [vmem:[%s606_s17] sm:$0xff] %vm554_vm4, %v603_v41 }
 0x2be   : > { %v604_v43 = vsel %vm600_vm6, %v596_v39, %v602_v42 }
 0x2bf   : > { %608 = vst.msk [vmem:[%s606_s17 + $0x8] sm:$0xff] %vm554_vm4, %v604_v43 }
 0x2c6   : > { %v615_v44 = vld [vmem:[#allocation3] sm:$0xff]  ;;  %v616_v45 = vld [vmem:[#allocation3 + $0x8] sm:$0xff]  ;;  %v617_v46 = vld [vmem:[#allocation3 + $0x10] sm:$0xff] }
 0x2c7   : > { %v958_v48 = vpack.c.bf16 %v616_v45, %v615_v44  ;;  %v618_v49 = vld [vmem:[#allocation3 + $0x18] sm:$0xff] }
 0x2c8   : > { %v961_v55 = vpack.c.bf16 %v618_v49, %v617_v46 }
 0x2c9   : > { %959 = vmatpush3.bf16.msra.mxu0 %v958_v48 }
 0x2ca   : > { %960 = vmatprep.subr.bf16.mxu0 %v1100_v47 }
 0x2cd   : > { %962 = vmatpush3.bf16.msra.mxu0 %v961_v55 }
 0x2d0   : > { %932 = vmatmul.mubr.msk.f32.vlgmr.msra.gmra.mrb[0].mxu0 %vm554_vm4, %v614_v58 }
 0x3a3   : > { %v688_v59 = vpop.f32.mrb[0].mxu0 }
 0x3a4   : > { %v933_v60 = vpop.f32.mrb[1].mxu0  ;;  %943 = vmatmul.mubr.msk.f32.vlgmr.msra.gmra.mrb[0].mxu1 %vm554_vm4, %v688_v59 }
 0x477   : > { %v772_v62 = vpop.f32.mrb[0].mxu1 }
 0x478   : > { %v773_v63 = vadd.f32 %v858_v61, %v772_v62  ;;  %v944_v0 = vpop.f32.mrb[1].mxu1 }
 0x47a   : > { %777 = vst.msk [vmem:[#allocation4] sm:$0x3] %vm776_vm8, %v773_v63 }
 0x47b PF: > { %p1275_p13 = scmp.eq.s32.totalorder %s839_s10, 3  ;;  %s1103_s14 = smov [#allocation4]  }
 0x47c   : > { %s785_s15 = sshll.u32 %s1103_s14, 4  ;;  %s786_s15 = int_to_ptr.vmem [resolvable:$true] %s785_s15 }
 0x47d   : > { %s1028_s17 = scalar_lea.vmem %s786_s15, 32  ;;  %p1035_p3 = scmp.lt.s32.totalorder %s786_s15, %s786_s15 }
 0x47e   : > { %p1029_p0 = scmp.ne.s32.totalorder %s786_s15, %s1028_s17  ;;  %p1036_p4 = scmp.lt.s32.totalorder %s1028_s17, %s1028_s17 }
 0x480   : > { %p1030_p1 = pnand %p1029_p0, %p1275_p13  ;;  %p1037_p5 = por %p1036_p4, %p1035_p3 }
 0x482   : > { %p1031_p2 = pneg %p1030_p1 }
 0x484   : > { %p1038_p6 = pnand %p1037_p5, %p1031_p2 }
 0x486   : > { %1041 = shalt.err (!%p1038_p6)
}
 0x487   : > { %s1042_s10 = scalar_lea.hbm %s1324_s8, 32 }
 0x488   : > { %p1043_p7 = scmp.ne.s32.totalorder %s1324_s8, %s1042_s10  ;;  %p1048_p10 = scmp.lt.u32.totalorder %s1042_s10, %s1324_s8 }
 0x48a   : > { %p1044_p8 = pnand %p1043_p7, %p1275_p13 }
 0x48c   : > { %p1045_p9 = pneg %p1044_p8 }
 0x48e   : > { %p1050_p11 = pnand %p1048_p10, %p1045_p9 }
 0x490   : > { %1053 = shalt.err (!%p1050_p11)
}
 0x491   : > { %976 = dma.vmem_to_hbm [thread:$0]  (%p1275_p13), %s786_s15, 32, %s1324_s8, [#allocation5]  }
 0x492   : > { %1075 = dma.done.wait (%p1275_p13), [#allocation5], 32  }
 0x493   : > { %1077 = vsyncadd (%p1275_p13), [#allocation5], 4294967264 }
 0x494 PF: > { %s19_s9 = sadd.s32 1, %s1096_s9   ;;  %s1327_s27 = smov %s1088_s29 }
 0x495   : > { %p16_p12 = scmp.ge.s32.totalorder %s19_s9, 6   ;;  %s1328_s28 = smov %s1092_s30 }
 0x496   : > { %s1329_s29 = smov %s1332_s11  ;;  %s1330_s30 = smov %s1336_s12 }
 0x497   :  { %18 = sbr.rel (!%p16_p12) target bundleno = 3 (0x3), region = 93 }
 0x49e   :  { %798 = vsyncpa [#allocation5], 1 }
 0x49f   :  { %800 = vsyncpa [#allocation5 + $0x1], 1 }

</bundles_post_ra>
